<compile_context>
chip_gen: v5e
topology: v5e:2x2
jax: 0.10.0
libtpu: 0.0.40
codegen_flags: <defaults>
</compile_context>

<pallas_src>
import jax
import jax.numpy as jnp
from jax.experimental import pallas as pl
from jax.experimental.pallas import tpu as pltpu

IN_F, HID_F, OUT_F = 784, 100, 10      # logical (PyTorch) dims
HID_P, OUT_P = 128, 128                # lane-dense padded feature dims
MAX_BLOCK_B = 1024                     # batch tile cap (fits scoped VMEM on v5e/v6e/v7x)
MIN_PARALLEL_B = 256                   # below this: single grid step (latency regime)


def _round_up(n, m):
    return (n + m - 1) // m * m


def mlp_kernel(x_ref, w1_ref, b1_ref, w2_ref, b2_ref, o_ref):
    # x arrives as f32 straight from HBM; cast to bf16 in-kernel right before
    # the MXU (no wrapper-side pad/cast pass over the whole batch).
    x = x_ref[...].astype(jnp.bfloat16)

    # Layer 1: [tb, 784]bf16 @ [784, 128]bf16 -> f32 accumulate, bias, sigmoid.
    h = jnp.dot(x, w1_ref[...], preferred_element_type=jnp.float32)
    h = jax.nn.sigmoid(h + b1_ref[...])                        # f32, EUP

    # Layer 2: [tb, 128]bf16 @ [128, 128]bf16 -> f32 accumulate, bias, sigmoid.
    o = jnp.dot(h.astype(jnp.bfloat16), w2_ref[...],
                preferred_element_type=jnp.float32)
    o_ref[...] = jax.nn.sigmoid(o + b2_ref[...]).astype(o_ref.dtype)   # bf16 store


def prepare_params(w1, b1, w2, b2):
    """One-time weight prep (cache the result across forward calls):
    pad feature dims to lane-dense multiples of 128, cast matmul operands to
    bf16, keep biases f32."""
    w1p = jnp.zeros((IN_F, HID_P), jnp.bfloat16).at[:, :HID_F].set(
        w1.astype(jnp.bfloat16))
    b1p = jnp.zeros((1, HID_P), jnp.float32).at[:, :HID_F].set(
        b1.reshape(1, HID_F).astype(jnp.float32))
    # Zero rows [HID_F:] of w2p neutralize padded hidden lanes (sigmoid(0)=0.5);
    # zero cols [OUT_F:] only feed padded output lanes that get sliced off.
    w2p = jnp.zeros((HID_P, OUT_P), jnp.bfloat16).at[:HID_F, :OUT_F].set(
        w2.astype(jnp.bfloat16))
    b2p = jnp.zeros((1, OUT_P), jnp.float32).at[:, :OUT_F].set(
        b2.reshape(1, OUT_F).astype(jnp.float32))
    return w1p, b1p, w2p, b2p


def _choose_batch_tile(B, max_block=MAX_BLOCK_B):
    """Pick (tile_rows, num_steps): tile is sublane-aligned, per-step batch
    padding is bounded (<16 rows/step), and for large B the grid has >=2
    (even) steps so the 'parallel' axis can shard across v7x's two TCs."""
    if B <= MIN_PARALLEL_B:
        nsteps = 1
        tb = _round_up(B, 8)          # single step; tb == padded batch extent
    else:
        nsteps = 2 * pl.cdiv(B, 2 * max_block)
        tb = _round_up(pl.cdiv(B, nsteps), 16)
    return tb, nsteps


def net_forward(x, prepared_params):
    """Forward pass of `Net`. x: [B, 784] (f32 or bf16) -> [B, 10] f32.
    `prepared_params` comes from prepare_params()."""
    w1p, b1p, w2p, b2p = prepared_params
    B = x.shape[0]
    tb, nsteps = _choose_batch_tile(B)
    b_pad = tb * nsteps               # kernel-output rows; extra rows sliced off

    cost = pl.CostEstimate(
        flops=2 * B * (IN_F * HID_F + HID_F * OUT_F),
        transcendentals=B * (HID_F + OUT_F),
        bytes_accessed=(x.size * x.dtype.itemsize          # x streamed as-is
                        + w1p.size * 2 + w2p.size * 2
                        + b1p.size * 4 + b2p.size * 4
                        + b_pad * OUT_P * 2),               # bf16 output
    )

    out = pl.pallas_call(
        mlp_kernel,
        out_shape=jax.ShapeDtypeStruct((b_pad, OUT_P), jnp.bfloat16),
        grid_spec=pltpu.PrefetchScalarGridSpec(
            num_scalar_prefetch=0,
            grid=(nsteps,),
            in_specs=[
                pl.BlockSpec((tb, IN_F), lambda i: (i, 0)),       # x tile (unpadded K=784)
                pl.BlockSpec((IN_F, HID_P), lambda i: (0, 0)),    # w1 resident
                pl.BlockSpec((1, HID_P), lambda i: (0, 0)),       # b1 resident
                pl.BlockSpec((HID_P, OUT_P), lambda i: (0, 0)),   # w2 resident
                pl.BlockSpec((1, OUT_P), lambda i: (0, 0)),       # b2 resident
            ],
            out_specs=pl.BlockSpec((tb, OUT_P), lambda i: (i, 0)),
        ),
        compiler_params=pltpu.CompilerParams(
            dimension_semantics=("parallel",),
        ),
        cost_estimate=cost,
    )(x, w1p, b1p, w2p, b2p)

    # Slice padded batch rows / padded output lanes; return f32 like the
    # PyTorch module (tiny (B,10) cast).
    return out[:B, :OUT_F].astype(jnp.float32)


def init_params(key):
    """Deterministic init mirroring torch.nn.Linear (uniform +-1/sqrt(fan_in))."""
    k1, k2, k3, k4 = jax.random.split(key, 4)
    bound1 = 1.0 / jnp.sqrt(784.0)
    bound2 = 1.0 / jnp.sqrt(100.0)
    w1 = jax.random.uniform(k1, (IN_F, HID_F), jnp.float32, -bound1, bound1)
    b1 = jax.random.uniform(k2, (1, HID_F), jnp.float32, -bound1, bound1)
    w2 = jax.random.uniform(k3, (HID_F, OUT_F), jnp.float32, -bound2, bound2)
    b2 = jax.random.uniform(k4, (1, OUT_F), jnp.float32, -bound2, bound2)
    return w1, b1, w2, b2


if __name__ == "__main__":
    key = jax.random.PRNGKey(0)
    k_x, k_x2, k_p = jax.random.split(key, 3)

    w1, b1, w2, b2 = init_params(k_p)
    params = jax.block_until_ready(prepare_params(w1, b1, w2, b2))  # one-time prep

    def ref_fwd(x):
        return jax.nn.sigmoid(jax.nn.sigmoid(x @ w1 + b1) @ w2 + b2)

    # Small batch: single grid step.
    B = 8
    x = jax.random.normal(k_x, (B, IN_F), jnp.float32)
    out = jax.block_until_ready(net_forward(x, params))
    assert out.shape == (B, OUT_F)
    assert jnp.allclose(out, ref_fwd(x), atol=2e-2), "mismatch (small batch)"

    # Larger ragged batch: multi-step grid with a partial last x tile.
    B2 = 300
    x2 = jax.random.normal(k_x2, (B2, IN_F), jnp.float32)
    out2 = jax.block_until_ready(net_forward(x2, params))
    assert out2.shape == (B2, OUT_F)
    assert jnp.allclose(out2, ref_fwd(x2), atol=2e-2), "mismatch (ragged batch)"

    print("KERNEL_OK")
</pallas_src>

<mosaic_0001>
module attributes {stable_mosaic.version = 11 : i64} {
  func.func @mlp_kernel(%arg0: i32, %arg1: memref<8x784xf32, #tpu.memory_space<vmem>>, %arg2: memref<784x128xbf16, #tpu.memory_space<vmem>>, %arg3: memref<1x128xf32, #tpu.memory_space<vmem>>, %arg4: memref<128x128xbf16, #tpu.memory_space<vmem>>, %arg5: memref<1x128xf32, #tpu.memory_space<vmem>>, %arg6: memref<8x128xbf16, #tpu.memory_space<vmem>>) attributes {dimension_semantics = [#tpu.dimension_semantics<parallel>], iteration_bounds = array<i64: 1>, scalar_prefetch = 0 : i64, scratch_operands = 0 : i64, tpu.core_type = #tpu.core_type<tc>, window_params = [{transform_indices = @transform_0, window_bounds = array<i64: 8, 784>}, {pipeline_mode = #tpu.pipeline_mode<synchronous>, transform_indices = @transform_1, window_bounds = array<i64: 784, 128>}, {pipeline_mode = #tpu.pipeline_mode<synchronous>, transform_indices = @transform_2, window_bounds = array<i64: 1, 128>}, {pipeline_mode = #tpu.pipeline_mode<synchronous>, transform_indices = @transform_3, window_bounds = array<i64: 128, 128>}, {pipeline_mode = #tpu.pipeline_mode<synchronous>, transform_indices = @transform_4, window_bounds = array<i64: 1, 128>}, {transform_indices = @transform_5, window_bounds = array<i64: 8, 128>}]} {
    %c0 = arith.constant 0 : index
    %c0_0 = arith.constant 0 : index
    %0 = vector.load %arg1[%c0, %c0_0] : memref<8x784xf32, #tpu.memory_space<vmem>>, vector<8x784xf32>
    %1 = arith.truncf %0 : vector<8x784xf32> to vector<8x784xbf16>
    %c0_1 = arith.constant 0 : index
    %c0_2 = arith.constant 0 : index
    %2 = vector.load %arg2[%c0_1, %c0_2] : memref<784x128xbf16, #tpu.memory_space<vmem>>, vector<784x128xbf16>
    %cst = arith.constant dense<0.000000e+00> : vector<8x128xf32>
    %3 = tpu.matmul %1, %2, %cst {dimension_numbers = #tpu.dot_dimension_numbers<[1], [0], [0], [1], [0, 0, 1, 1], [], []>} : vector<8x784xbf16>, vector<784x128xbf16>, vector<8x128xf32> -> vector<8x128xf32>
    %c0_3 = arith.constant 0 : index
    %c0_4 = arith.constant 0 : index
    %4 = vector.load %arg3[%c0_3, %c0_4] : memref<1x128xf32, #tpu.memory_space<vmem>>, vector<1x128xf32>
    %5 = vector.broadcast %4 : vector<1x128xf32> to vector<8x128xf32>
    %6 = arith.addf %3, %5 : vector<8x128xf32>
    %7 = arith.negf %6 : vector<8x128xf32>
    %8 = math.exp %7 : vector<8x128xf32>
    %cst_5 = arith.constant 1.000000e+00 : f32
    %9 = vector.broadcast %cst_5 : f32 to vector<8x128xf32>
    %10 = arith.addf %9, %8 : vector<8x128xf32>
    %11 = arith.divf %9, %10 : vector<8x128xf32>
    %12 = arith.truncf %11 : vector<8x128xf32> to vector<8x128xbf16>
    %c0_6 = arith.constant 0 : index
    %c0_7 = arith.constant 0 : index
    %13 = vector.load %arg4[%c0_6, %c0_7] : memref<128x128xbf16, #tpu.memory_space<vmem>>, vector<128x128xbf16>
    %cst_8 = arith.constant dense<0.000000e+00> : vector<8x128xf32>
    %14 = tpu.matmul %12, %13, %cst_8 {dimension_numbers = #tpu.dot_dimension_numbers<[1], [0], [0], [1], [0, 0, 1, 1], [], []>} : vector<8x128xbf16>, vector<128x128xbf16>, vector<8x128xf32> -> vector<8x128xf32>
    %c0_9 = arith.constant 0 : index
    %c0_10 = arith.constant 0 : index
    %15 = vector.load %arg5[%c0_9, %c0_10] : memref<1x128xf32, #tpu.memory_space<vmem>>, vector<1x128xf32>
    %16 = vector.broadcast %15 : vector<1x128xf32> to vector<8x128xf32>
    %17 = arith.addf %14, %16 : vector<8x128xf32>
    %18 = arith.negf %17 : vector<8x128xf32>
    %19 = math.exp %18 : vector<8x128xf32>
    %cst_11 = arith.constant 1.000000e+00 : f32
    %20 = vector.broadcast %cst_11 : f32 to vector<8x128xf32>
    %21 = arith.addf %20, %19 : vector<8x128xf32>
    %22 = arith.divf %20, %21 : vector<8x128xf32>
    %23 = arith.truncf %22 : vector<8x128xf32> to vector<8x128xbf16>
    %c0_12 = arith.constant 0 : index
    %c0_13 = arith.constant 0 : index
    %24 = vector.load %arg6[%c0_12, %c0_13] : memref<8x128xbf16, #tpu.memory_space<vmem>>, vector<8x128xbf16>
    tpu.vector_store %arg6[%c0_12, %c0_13], %23 {strides = array<i32>} : memref<8x128xbf16, #tpu.memory_space<vmem>>, vector<8x128xbf16>,
    return
  }
  func.func @transform_0(%arg0: i32) -> (i32, i32) {
    %c0_i32 = arith.constant 0 : i32
    %c0_i32_0 = arith.constant 0 : i32
    return %arg0, %c0_i32 : i32, i32
  }
  func.func @transform_1(%arg0: i32) -> (i32, i32) {
    %c0_i32 = arith.constant 0 : i32
    %c0_i32_0 = arith.constant 0 : i32
    %c0_i32_1 = arith.constant 0 : i32
    return %c0_i32, %c0_i32_0 : i32, i32
  }
  func.func @transform_2(%arg0: i32) -> (i32, i32) {
    %c0_i32 = arith.constant 0 : i32
    %c0_i32_0 = arith.constant 0 : i32
    %c0_i32_1 = arith.constant 0 : i32
    return %c0_i32, %c0_i32_0 : i32, i32
  }
  func.func @transform_3(%arg0: i32) -> (i32, i32) {
    %c0_i32 = arith.constant 0 : i32
    %c0_i32_0 = arith.constant 0 : i32
    %c0_i32_1 = arith.constant 0 : i32
    return %c0_i32, %c0_i32_0 : i32, i32
  }
  func.func @transform_4(%arg0: i32) -> (i32, i32) {
    %c0_i32 = arith.constant 0 : i32
    %c0_i32_0 = arith.constant 0 : i32
    %c0_i32_1 = arith.constant 0 : i32
    return %c0_i32, %c0_i32_0 : i32, i32
  }
  func.func @transform_5(%arg0: i32) -> (i32, i32) {
    %c0_i32 = arith.constant 0 : i32
    %c0_i32_0 = arith.constant 0 : i32
    return %arg0, %c0_i32 : i32, i32
  }
}

</mosaic_0001>

<bundles_post_ra>
// kernel: tpu_custom_call.1
= control target key start
LH: loop header
LB: loop body
LE: loop exit
PB: predicated region body
PF: predicated region fallthrough
CT: control target
= control target key end

     0   :  { %10 = vsyncpa [#allocation3], 0  ;;  %s1172_s0 = inlined_call_operand.hbm [shape: f32[8,784], index: 0, kind: input, shape index: {}]   ;;  %s1173_s1 = inlined_call_operand.hbm [shape: bf16[784,128], index: 1, kind: input, shape index: {}]   ;;  %s1174_s2 = inlined_call_operand.vmem [shape: f32[1,128], index: 2, kind: input, shape index: {}]   ;;  %s1175_s3 = inlined_call_operand.hbm [shape: bf16[128,128], index: 3, kind: input, shape index: {}]   ;;  %s1176_s4 = inlined_call_operand.vmem [shape: f32[1,128], index: 4, kind: input, shape index: {}]   ;;  %s1177_s5 = inlined_call_operand.hbm [shape: bf16[8,128], index: 5, kind: output, shape index: {}]  }
   0x1   :  { %11 = vsyncpa [#allocation6], 0  ;;  %s28_s20 = sshll.u32 %s1173_s1, 4  ;;  %s29_s20 = int_to_ptr.hbm [resolvable:$true] %s28_s20 }
   0x2   :  { %12 = vsyncpa [#allocation4], 0  ;;  %s1118_s21 = smov [#allocation5]   ;;  %s18_s25 = sshll.u32 %s1172_s0, 4  ;;  %s19_s25 = int_to_ptr.hbm [resolvable:$true] %s18_s25 }
   0x3   :  { %s30_s22 = sshll.u32 %s1118_s21, 4  ;;  %s1119_s26 = smov 64   ;;  %s31_s22 = int_to_ptr.vmem [resolvable:$true] %s30_s22 }
   0x4   :  { %s1120_s27 = smov 4   ;;  %s1121_s28 = smov [#allocation2]  }
   0x5   :  { %36 = dma.hbm_to_vmem [thread:$0]  %s29_s20, 6272, %s31_s22, [#allocation6], %s1119_s26, %s1119_s26, %s1120_s27  }
   0x6   :  { %s20_s29 = sshll.u32 %s1121_s28, 4  ;;  %s43_s7 = sshll.u32 %s1175_s3, 4  ;;  %s21_s29 = int_to_ptr.vmem [resolvable:$true] %s20_s29  ;;  %s44_s7 = int_to_ptr.hbm [resolvable:$true] %s43_s7 }
   0x7   :  { %23 = dma.hbm_to_vmem [thread:$0]  %s19_s25, 896, %s21_s29, [#allocation3]  }
   0x8   :  { %s1122_s1 = smov [#allocation7]  }
   0x9   :  { %s45_s8 = sshll.u32 %s1122_s1, 4  ;;  %s46_s8 = int_to_ptr.vmem [resolvable:$true] %s45_s8 }
   0xa   :  { %51 = dma.hbm_to_vmem [thread:$0]  %s44_s7, 1024, %s46_s8, [#allocation6], %s1119_s26, %s1119_s26, %s1120_s27  }
   0xb   :  { %1112 = dma.done.wait [#allocation3], 896  }
   0xc   :  { %1113 = vsyncadd [#allocation3], 4294966400 }
   0xd   :  { %1114 = dma.done.wait [#allocation6], 7296  }
   0xe   :  { %1115 = vsyncadd [#allocation6], 4294960000  ;;  %v950_v0 = vld [vmem:[#allocation5 + $0x38] sm:$0xff]  ;;  %v949_v3 = vld [vmem:[#allocation5 + $0x30] sm:$0xff]  ;;  %vm477_vm0 = vcmask 130048   ;;  %s701_s13 = sshll.u32 %s1177_s5, 4  ;;  %s702_s13 = int_to_ptr.hbm [resolvable:$true] %s701_s13 }
   0xf   :  { %v958_v1 = vld [vmem:[#allocation5 + $0x78] sm:$0xff]  ;;  %481 = vmatpush.bf16.msra.mxu0 %v950_v0  ;;  %v957_v4 = vld [vmem:[#allocation5 + $0x70] sm:$0xff]  ;;  %v948_v8 = vld [vmem:[#allocation5 + $0x28] sm:$0xff] }
  0x10   :  { %v966_v2 = vld [vmem:[#allocation5 + $0xb8] sm:$0xff]  ;;  %494 = vmatpush.bf16.msra.mxu1 %v958_v1  ;;  %v965_v5 = vld [vmem:[#allocation5 + $0xb0] sm:$0xff]  ;;  %v956_v9 = vld [vmem:[#allocation5 + $0x68] sm:$0xff] }
  0x11   :  { %507 = vmatpush.bf16.msra.mxu2 %v966_v2  ;;  %v974_v6 = vld [vmem:[#allocation5 + $0xf8] sm:$0xff]  ;;  %v973_v7 = vld [vmem:[#allocation5 + $0xf0] sm:$0xff]  ;;  %v964_v10 = vld [vmem:[#allocation5 + $0xa8] sm:$0xff] }
  0x12   :  { %520 = vmatpush.bf16.msra.mxu3 %v974_v6  ;;  %v972_v11 = vld [vmem:[#allocation5 + $0xe8] sm:$0xff]  ;;  %v947_v12 = vld [vmem:[#allocation5 + $0x20] sm:$0xff]  ;;  %v946_v16 = vld [vmem:[#allocation5 + $0x18] sm:$0xff] }
  0x13   :  { %482 = vmatpush.bf16.msra.mxu0 %v949_v3  ;;  %v955_v13 = vld [vmem:[#allocation5 + $0x60] sm:$0xff]  ;;  %v954_v17 = vld [vmem:[#allocation5 + $0x58] sm:$0xff]  ;;  %v945_v20 = vld [vmem:[#allocation5 + $0x10] sm:$0xff] }
  0x14   :  { %495 = vmatpush.bf16.msra.mxu1 %v957_v4  ;;  %v963_v14 = vld [vmem:[#allocation5 + $0xa0] sm:$0xff]  ;;  %v962_v18 = vld [vmem:[#allocation5 + $0x98] sm:$0xff]  ;;  %v953_v21 = vld [vmem:[#allocation5 + $0x50] sm:$0xff] }
  0x15   :  { %508 = vmatpush.bf16.msra.mxu2 %v965_v5  ;;  %v971_v15 = vld [vmem:[#allocation5 + $0xe0] sm:$0xff]  ;;  %v970_v19 = vld [vmem:[#allocation5 + $0xd8] sm:$0xff]  ;;  %v961_v22 = vld [vmem:[#allocation5 + $0x90] sm:$0xff] }
  0x16   :  { %521 = vmatpush.bf16.msra.mxu3 %v973_v7  ;;  %v969_v23 = vld [vmem:[#allocation5 + $0xd0] sm:$0xff]  ;;  %v944_v24 = vld [vmem:[#allocation5 + $0x8] sm:$0xff]  ;;  %v943_v27 = vld [vmem:[#allocation5] sm:$0xff] }
  0x17   :  { %483 = vmatpush.bf16.msra.mxu0 %v948_v8  ;;  %v952_v25 = vld [vmem:[#allocation5 + $0x48] sm:$0xff]  ;;  %v951_v29 = vld [vmem:[#allocation5 + $0x40] sm:$0xff]  ;;  %v68_v31 = vld [vmem:[#allocation2 + $0x8] sm:$0xff] }
  0x18   :  { %496 = vmatpush.bf16.msra.mxu1 %v956_v9  ;;  %v960_v26 = vld [vmem:[#allocation5 + $0x88] sm:$0xff]  ;;  %v982_v32 = vld [vmem:[#allocation5 + $0x138] sm:$0xff]  ;;  %v959_v34 = vld [vmem:[#allocation5 + $0x80] sm:$0xff]  ;;  %v75_v37 = vpack.c.bf16 %v68_v31, %v68_v31 }
  0x19   :  { %509 = vmatpush.bf16.msra.mxu2 %v964_v10  ;;  %v968_v28 = vld [vmem:[#allocation5 + $0xc8] sm:$0xff]  ;;  %v990_v33 = vld [vmem:[#allocation5 + $0x178] sm:$0xff]  ;;  %v967_v38 = vld [vmem:[#allocation5 + $0xc0] sm:$0xff] }
  0x1a   :  { %522 = vmatpush.bf16.msra.mxu3 %v972_v11  ;;  %v67_v30 = vld [vmem:[#allocation2] sm:$0xff]  ;;  %v69_v35 = vld [vmem:[#allocation2 + $0x10] sm:$0xff]  ;;  %v991_v39 = vld [vmem:[#allocation5 + $0x180] sm:$0xff] }
  0x1b   :  { %484 = vmatpush.bf16.msra.mxu0 %v947_v12  ;;  %v74_v36 = vpack.c.bf16 %v67_v30, %v67_v30  ;;  %v70_v40 = vld [vmem:[#allocation2 + $0x18] sm:$0xff]  ;;  %v981_v41 = vld [vmem:[#allocation5 + $0x130] sm:$0xff]  ;;  %v76_v43 = vpack.c.bf16 %v69_v35, %v69_v35  ;;  %v980_v45 = vld [vmem:[#allocation5 + $0x128] sm:$0xff] }
  0x1c   :  { %497 = vmatpush.bf16.msra.mxu1 %v955_v13  ;;  %v989_v42 = vld [vmem:[#allocation5 + $0x170] sm:$0xff]  ;;  %v77_v44 = vpack.c.bf16 %v70_v40, %v70_v40  ;;  %v988_v46 = vld [vmem:[#allocation5 + $0x168] sm:$0xff]  ;;  %v979_v47 = vld [vmem:[#allocation5 + $0x120] sm:$0xff] }
  0x1d   :  { %510 = vmatpush.bf16.msra.mxu2 %v963_v14  ;;  %v987_v48 = vld [vmem:[#allocation5 + $0x160] sm:$0xff]  ;;  %v978_v49 = vld [vmem:[#allocation5 + $0x118] sm:$0xff]  ;;  %v977_v52 = vld [vmem:[#allocation5 + $0x110] sm:$0xff] }
  0x1e   :  { %523 = vmatpush.bf16.msra.mxu3 %v971_v15  ;;  %v986_v50 = vld [vmem:[#allocation5 + $0x158] sm:$0xff]  ;;  %v985_v53 = vld [vmem:[#allocation5 + $0x150] sm:$0xff]  ;;  %v976_v55 = vld [vmem:[#allocation5 + $0x108] sm:$0xff] }
  0x1f   :  { %485 = vmatpush.bf16.msra.mxu0 %v946_v16  ;;  %v73_v51 = vld [vmem:[#allocation2 + $0x30] sm:$0xff]  ;;  %v984_v56 = vld [vmem:[#allocation5 + $0x148] sm:$0xff]  ;;  %v975_v57 = vld [vmem:[#allocation5 + $0x100] sm:$0xff] }
  0x20   :  { %498 = vmatpush.bf16.msra.mxu1 %v954_v17  ;;  %v80_v54 = vpack.c.bf16 %v73_v51, %v73_v51  ;;  %v983_v58 = vld [vmem:[#allocation5 + $0x140] sm:$0xff]  ;;  %v71_v59 = vld [vmem:[#allocation2 + $0x20] sm:$0xff]  ;;  %v72_v60 = vld [vmem:[#allocation2 + $0x28] sm:$0xff] }
  0x21   :  { %511 = vmatpush.bf16.msra.mxu2 %v962_v18  ;;  %v78_v61 = vpack.c.bf16 %v71_v59, %v71_v59  ;;  %v79_v62 = vpack.c.bf16 %v72_v60, %v72_v60  ;;  %v999_v1 = vld [vmem:[#allocation7 + $0x38] sm:$0xff]  ;;  %v998_v2 = vld [vmem:[#allocation7 + $0x30] sm:$0xff]  ;;  %v997_v6 = vld [vmem:[#allocation7 + $0x28] sm:$0xff] }
  0x22   :  { %524 = vmatpush.bf16.msra.mxu3 %v970_v19  ;;  %v1006_v8 = vld [vmem:[%s1174_s2] ss:$0 sm:$0xff]  ;;  %v995_v10 = vld [vmem:[#allocation7 + $0x18] sm:$0xff]  ;;  %v994_v14 = vld [vmem:[#allocation7 + $0x10] sm:$0xff] }
  0x23   :  { %486 = vmatpush.bf16.msra.mxu0 %v945_v20  ;;  %v996_v9 = vld [vmem:[#allocation7 + $0x20] sm:$0xff]  ;;  %v993_v16 = vld [vmem:[#allocation7 + $0x8] sm:$0xff] }
  0x24   :  { %499 = vmatpush.bf16.msra.mxu1 %v953_v21  ;;  %v992_v19 = vld [vmem:[#allocation7] sm:$0xff] }
  0x25   :  { %512 = vmatpush.bf16.msra.mxu2 %v961_v22 }
  0x26   :  { %525 = vmatpush.bf16.msra.mxu3 %v969_v23 }
  0x27   :  { %487 = vmatpush.bf16.msra.mxu0 %v944_v24 }
  0x28   :  { %500 = vmatpush.bf16.msra.mxu1 %v952_v25 }
  0x29   :  { %513 = vmatpush.bf16.msra.mxu2 %v960_v26 }
  0x2a   :  { %526 = vmatpush.bf16.msra.mxu3 %v968_v28 }
  0x2b   :  { %488 = vmatpush.bf16.msra.mxu0 %v943_v27 }
  0x2c   :  { %501 = vmatpush.bf16.msra.mxu1 %v951_v29 }
  0x2d   :  { %514 = vmatpush.bf16.msra.mxu2 %v959_v34 }
  0x2e   :  { %489 = vmatmul.bf16.vlgmr.msra.gmra.mxu0 %v74_v36  ;;  %527 = vmatpush.bf16.msra.mxu3 %v967_v38 }
  0x2f   :  { %533 = vmatpush.bf16.msrb.mxu0 %v982_v32  ;;  %502 = vmatmul.bf16.vlgmr.msra.gmra.mxu1 %v75_v37 }
  0x30   :  { %546 = vmatpush.bf16.msrb.mxu1 %v990_v33  ;;  %515 = vmatmul.bf16.vlgmr.msra.gmra.mxu2 %v76_v43  ;;  %v1007_v43 = vld [vmem:[%s1176_s4] ss:$0 sm:$0xff]  ;;  %s1123_s4 = smov [#allocation8]  }
  0x31   :  { %566 = vmatpush.bf16.msrb.mxu2 %v991_v39  ;;  %528 = vmatmul.bf16.vlgmr.msra.gmra.mxu3 %v77_v44  ;;  %s699_s10 = sshll.u32 %s1123_s4, 4  ;;  %s700_s10 = int_to_ptr.vmem [resolvable:$true] %s699_s10 }
  0x32   :  { %660 = vmatpush.bf16.msrb.mxu3 %v999_v1 }
  0x33   :  { %534 = vmatpush.bf16.msrb.mxu0 %v981_v41 }
  0x34   :  { %547 = vmatpush.bf16.msrb.mxu1 %v989_v42 }
  0x36   :  { %661 = vmatpush.bf16.msrb.mxu3 %v998_v2 }
  0x37   :  { %535 = vmatpush.bf16.msrb.mxu0 %v980_v45 }
  0x38   :  { %548 = vmatpush.bf16.msrb.mxu1 %v988_v46 }
  0x3a   :  { %662 = vmatpush.bf16.msrb.mxu3 %v997_v6 }
  0x3b   :  { %536 = vmatpush.bf16.msrb.mxu0 %v979_v47 }
  0x3c   :  { %549 = vmatpush.bf16.msrb.mxu1 %v987_v48 }
  0x3e   :  { %663 = vmatpush.bf16.msrb.mxu3 %v996_v9 }
  0x3f   :  { %537 = vmatpush.bf16.msrb.mxu0 %v978_v49 }
  0x40   :  { %550 = vmatpush.bf16.msrb.mxu1 %v986_v50  ;;  %908 = vmatmul.msk.bf16.vlgmr.msrb.gmra.mxu2 %vm477_vm0, %v80_v54 }
  0x42   :  { %664 = vmatpush.bf16.msrb.mxu3 %v995_v10 }
  0x43   :  { %538 = vmatpush.bf16.msrb.mxu0 %v977_v52 }
  0x44   :  { %551 = vmatpush.bf16.msrb.mxu1 %v985_v53 }
  0x46   :  { %665 = vmatpush.bf16.msrb.mxu3 %v994_v14 }
  0x47   :  { %539 = vmatpush.bf16.msrb.mxu0 %v976_v55 }
  0x48   :  { %552 = vmatpush.bf16.msrb.mxu1 %v984_v56 }
  0x4a   :  { %666 = vmatpush.bf16.msrb.mxu3 %v993_v16 }
  0x4b   :  { %540 = vmatpush.bf16.msrb.mxu0 %v975_v57 }
  0x4c   :  { %553 = vmatpush.bf16.msrb.mxu1 %v983_v58 }
  0x4e   :  { %541 = vmatmul.bf16.vlgmr.msrb.gmra.mxu0 %v78_v61  ;;  %667 = vmatpush.bf16.msrb.mxu3 %v992_v19 }
  0x4f   :  { %554 = vmatmul.bf16.vlgmr.msrb.gmra.mxu1 %v79_v62 }
  0xab   :  { %v490_v63 = vpop.f32.mrf.mxu0 }
  0xac   :  { %v503_v0 = vpop.f32.mrf.mxu1  ;;  %v491_v11 = vadd.f32 %v1006_v8, %v490_v63 }
  0xae   :  { %v504_v15 = vadd.f32 %v503_v0, %v491_v11 }
  0xb3   :  { %v492_v3 = vpop.f32.mrf.mxu0  ;;  %v516_v5 = vpop.f32.mrf.mxu2 }
  0xb4   :  { %v505_v4 = vpop.f32.mrf.mxu1  ;;  %v529_v7 = vpop.f32.mrf.mxu3  ;;  %v517_v17 = vadd.f32 %v516_v5, %v504_v15 }
  0xb6   :  { %v530_v20 = vadd.f32 %v529_v7, %v517_v17 }
  0xbb   :  { %v518_v12 = vpop.f32.mrf.mxu2 }
  0xbc   :  { %v531_v13 = vpop.f32.mrf.mxu3 }
  0xc3   :  { %v568_v18 = vpop.f32.mrf.mxu2 }
  0xcb   :  { %v542_v21 = vpop.f32.mrf.mxu0  ;;  %v570_v25 = vpop.f32.mrf.mxu2 }
  0xcc   :  { %v555_v22 = vpop.f32.mrf.mxu1  ;;  %v543_v23 = vadd.f32 %v542_v21, %v530_v20 }
  0xce   :  { %v556_v24 = vadd.f32 %v555_v22, %v543_v23 }
  0xd0   :  { %v569_v26 = vadd.f32 %v568_v18, %v556_v24 }
  0xd2   :  { %v909_v27 = vmul.f32 -1.442695, %v569_v26 }
  0xd3   :  { %v544_v28 = vpop.f32.mrf.mxu0 }
  0xd4   :  { %v557_v29 = vpop.f32.mrf.mxu1  ;;  %1008 = vpow2.f32 %v909_v27 }
  0xda   :  { %v1009_v30 = vpop.eup %1008 }
  0xdb   :  { %v575_v31 = vadd.f32 1.0, %v1009_v30 }
  0xdd   :  { %1010 = vrcp.f32 %v575_v31  ;;  %v587_v35 = vand.u32 2147483648, %v575_v31  ;;  %v585_v37 = vand.u32 2147483647, %v575_v31  ;;  %vm581_vm2 = vweird.f32 %v575_v31 }
  0xdf   :  { %v588_v39 = vor.u32 1.1754944e-38, %v587_v35  ;;  %vm586_vm4 = vcmp.eq.f32.partialorder %v585_v37, 8.507059e+37 }
  0xe3   :  { %v1011_v32 = vpop.eup %1010 }
  0xe4   :  { %v577_v33 = vmul.f32 %v1011_v32, %v575_v31  ;;  %vm582_vm1 = vweird.f32 %v1011_v32 }
  0xe5   :  { %vm583_vm3 = vmor %vm581_vm2, %vm582_vm1 }
  0xe6   :  { %v578_v34 = vsub.f32 1.0, %v577_v33 }
  0xe8   :  { %v579_v36 = vmul.f32 %v1011_v32, %v578_v34 }
  0xea   :  { %v580_v38 = vadd.f32 %v1011_v32, %v579_v36 }
  0xec   :  { %v584_v40 = vsel %vm583_vm3, %v1011_v32, %v580_v38 }
  0xed   :  { %v589_v41 = vsel %vm586_vm4, %v588_v39, %v584_v40 }
  0xee   :  { %v591_v42 = vpack.c.bf16 %v589_v41, %v589_v41 }
  0xf0   :  { %668 = vmatmul.bf16.vlgmr.msrb.gmra.mxu3 %v591_v42 }
 0x173   :  { %v669_v44 = vpop.f32.mrf.mxu3 }
 0x174   :  { %v670_v45 = vadd.f32 %v1007_v43, %v669_v44 }
 0x176   :  { %v942_v46 = vmul.f32 -1.442695, %v670_v45 }
 0x178   :  { %1012 = vpow2.f32 %v942_v46 }
 0x17b   :  { %v671_v47 = vpop.f32.mrf.mxu3 }
 0x17e   :  { %v1013_v48 = vpop.eup %1012 }
 0x17f   :  { %v676_v49 = vadd.f32 1.0, %v1013_v48 }
 0x181   :  { %1014 = vrcp.f32 %v676_v49  ;;  %v688_v53 = vand.u32 2147483648, %v676_v49  ;;  %v686_v55 = vand.u32 2147483647, %v676_v49  ;;  %vm682_vm6 = vweird.f32 %v676_v49 }
 0x183   :  { %v689_v57 = vor.u32 1.1754944e-38, %v688_v53  ;;  %vm687_vm8 = vcmp.eq.f32.partialorder %v686_v55, 8.507059e+37 }
 0x187   :  { %v1015_v50 = vpop.eup %1014 }
 0x188   :  { %v678_v51 = vmul.f32 %v1015_v50, %v676_v49  ;;  %vm683_vm5 = vweird.f32 %v1015_v50 }
 0x189   :  { %vm684_vm7 = vmor %vm682_vm6, %vm683_vm5 }
 0x18a   :  { %v679_v52 = vsub.f32 1.0, %v678_v51 }
 0x18c   :  { %v680_v54 = vmul.f32 %v1015_v50, %v679_v52 }
 0x18e   :  { %v681_v56 = vadd.f32 %v1015_v50, %v680_v54 }
 0x190   :  { %v685_v58 = vsel %vm684_vm7, %v1015_v50, %v681_v56 }
 0x191   :  { %v690_v59 = vsel %vm687_vm8, %v689_v57, %v685_v58 }
 0x192   :  { %v692_v60 = vpack.c.bf16 %v690_v59, %v690_v59 }
 0x194   :  { %693 = vst [vmem:[#allocation8] sm:$0xf] %v692_v60 }
 0x195   :  { %704 = dma.vmem_to_hbm [thread:$0]  %s700_s10, 64, %s702_s13, [#allocation4]  }
 0x196   :  { %1116 = dma.done.wait [#allocation4], 64  }
 0x197   :  { %1117 = vsyncadd [#allocation4], 4294967232 }
 0x198   :  { %709 = vsyncpa [#allocation3], 1 }
 0x199   :  { %710 = vsyncpa [#allocation6], 1 }
 0x19a   :  { %711 = vsyncpa [#allocation4], 1 }

</bundles_post_ra>
